<compile_context>
chip_gen: v5e
topology: v5e:2x2
jax: 0.10.0
libtpu: 0.0.40
codegen_flags: <defaults>
</compile_context>

<pallas_src>
import jax
import jax.numpy as jnp
from jax.experimental import pallas as pl
from jax.experimental.pallas import tpu as pltpu

STATE_DIM = 35    # 32 + 3 (ExcavatorEnv observation space)
ACTION_DIM = 3
HIDDEN = 180

MAX_TILE_B = 4096      # batch rows per grid step at large B (multiple of 128)
MIN_GRID_STEPS = 4     # keep >=4 steps at large B so v7x's 2nd TC gets work


def _cdiv(a, b):
    return -(-a // b)


def _round_up(x, m):
    return _cdiv(x, m) * m


def critic_kernel(state_ref, action_ref, w1s_ref, w1a_ref, b12_ref, w2_ref,
                  w3_ref, b3_ref, o_ref):
    """One batch-tile of the 3-layer critic MLP.

    state_ref : (TB, 35)   f32 VMEM
    action_ref: (TB, 3)    f32 VMEM
    w1s_ref   : (35, 180)  f32 VMEM   (rows of W1 multiplying `state`)
    w1a_ref   : (3, 180)   f32 VMEM   (rows of W1 multiplying `action`)
    b12_ref   : (2, 180)   f32 VMEM   (row 0 = b1, row 1 = b2)
    w2_ref    : (180, 180) f32 VMEM
    w3_ref    : (180, 1)   f32 VMEM
    b3_ref    : (1, 1)     f32 SMEM scalar
    o_ref     : (TB, 1)    f32 VMEM   (compact q output)
    """
    s = state_ref[...]
    a = action_ref[...]

    # Layer 1 — concat fused away: cat([s, a]) @ W1 == s @ W1[:35] + a @ W1[35:]
    h1 = jnp.dot(s, w1s_ref[...], preferred_element_type=jnp.float32)
    h1 = h1 + jnp.dot(a, w1a_ref[...], preferred_element_type=jnp.float32)
    h1 = jnp.maximum(h1 + b12_ref[0:1, :], 0.0)              # ReLU

    # Layer 2
    h2 = jnp.dot(h1, w2_ref[...], preferred_element_type=jnp.float32)
    h2 = jnp.maximum(h2 + b12_ref[1:2, :], 0.0)               # ReLU

    # Layer 3 — compact (TB, 1) output; b3 applied exactly once per row.
    o_ref[...] = (
        jnp.dot(h2, w3_ref[...], preferred_element_type=jnp.float32)
        + b3_ref[0, 0]
    )


@jax.jit
def critic_forward(state, action, kernel_params):
    """state: (B, 35) f32, action: (B, 3) f32 -> (B, 1) f32."""
    w1s, w1a, b12, w2, w3, b3 = kernel_params
    B = state.shape[0]

    # Sublane-aligned batch tile; keep >= MIN_GRID_STEPS grid steps once B is
    # large (megacore balance on v7x), cap rows/step at MAX_TILE_B.
    tile_b = min(MAX_TILE_B, max(8, _round_up(_cdiv(B, MIN_GRID_STEPS), 8)))
    grid = (_cdiv(B, tile_b),)   # no wrapper pad; Pallas masks the edge block

    def vmem_const(shape):
        # Constant block index -> operand stays VMEM-resident across steps.
        return pl.BlockSpec(shape, lambda i: (0, 0))

    flops = 2 * B * (STATE_DIM * HIDDEN + ACTION_DIM * HIDDEN
                     + HIDDEN * HIDDEN + HIDDEN * 1)
    bytes_accessed = 4 * (
        B * (STATE_DIM + ACTION_DIM + 1)
        + (STATE_DIM + ACTION_DIM) * HIDDEN + 2 * HIDDEN
        + HIDDEN * HIDDEN + HIDDEN + 1)

    q = pl.pallas_call(
        critic_kernel,
        out_shape=jax.ShapeDtypeStruct((B, 1), jnp.float32),
        grid=grid,
        in_specs=[
            pl.BlockSpec((tile_b, STATE_DIM), lambda i: (i, 0)),
            pl.BlockSpec((tile_b, ACTION_DIM), lambda i: (i, 0)),
            vmem_const((STATE_DIM, HIDDEN)),
            vmem_const((ACTION_DIM, HIDDEN)),
            vmem_const((2, HIDDEN)),
            vmem_const((HIDDEN, HIDDEN)),
            vmem_const((HIDDEN, 1)),
            pl.BlockSpec(memory_space=pltpu.MemorySpace.SMEM),   # b3 scalar
        ],
        out_specs=pl.BlockSpec((tile_b, 1), lambda i: (i, 0)),
        compiler_params=pltpu.CompilerParams(
            dimension_semantics=("parallel",)),
        cost_estimate=pl.CostEstimate(
            flops=flops, transcendentals=0, bytes_accessed=bytes_accessed),
    )(state, action, w1s, w1a, b12, w2, w3, b3)

    return q


def init_params(key):
    """PyTorch-layout params mimicking nn.Linear default init."""
    dims = [(STATE_DIM + ACTION_DIM, HIDDEN), (HIDDEN, HIDDEN), (HIDDEN, 1)]
    params = []
    for (fan_in, fan_out) in dims:
        key, kw, kb = jax.random.split(key, 3)
        bound = 1.0 / jnp.sqrt(float(fan_in))
        w = jax.random.uniform(kw, (fan_in, fan_out), jnp.float32, -bound, bound)
        b = jax.random.uniform(kb, (1, fan_out), jnp.float32, -bound, bound)
        params += [w, b]
    return tuple(params)


def prepare_kernel_params(params):
    """Repack reference-layout params into the kernel's operand layout."""
    w1, b1, w2, b2, w3, b3 = params
    w1s = w1[:STATE_DIM]                                   # (35, 180)
    w1a = w1[STATE_DIM:]                                   # (3, 180)
    b12 = jnp.concatenate([b1, b2], axis=0)                # (2, 180)
    b3s = b3.reshape(1, 1)                                 # SMEM scalar
    return (w1s, w1a, b12, w2, w3, b3s)


if __name__ == "__main__":
    key = jax.random.PRNGKey(0)
    k_state, k_action, k_params = jax.random.split(key, 3)

    B = 2
    state = jax.random.normal(k_state, (B, STATE_DIM), jnp.float32)
    action = jax.random.normal(k_action, (B, ACTION_DIM), jnp.float32)
    params = init_params(k_params)
    kernel_params = prepare_kernel_params(params)

    q = critic_forward(state, action, kernel_params)
    jax.block_until_ready(q)

    # pure-JAX reference (same math as the PyTorch module)
    x = jnp.concatenate([state, action], axis=-1)
    w1, b1, w2, b2, w3, b3 = params
    ref = jnp.maximum(x @ w1 + b1, 0.0)
    ref = jnp.maximum(ref @ w2 + b2, 0.0)
    ref = ref @ w3 + b3

    assert q.shape == (B, 1)
    assert jnp.allclose(q, ref, atol=1e-4, rtol=1e-4)

    print("KERNEL_OK")
</pallas_src>

<mosaic_0001>
module attributes {stable_mosaic.version = 11 : i64} {
  func.func @critic_kernel(%arg0: i32, %arg1: memref<8x35xf32, #tpu.memory_space<vmem>>, %arg2: memref<8x3xf32, #tpu.memory_space<vmem>>, %arg3: memref<35x180xf32, #tpu.memory_space<vmem>>, %arg4: memref<3x180xf32, #tpu.memory_space<vmem>>, %arg5: memref<2x180xf32, #tpu.memory_space<vmem>>, %arg6: memref<180x180xf32, #tpu.memory_space<vmem>>, %arg7: memref<180x1xf32, #tpu.memory_space<vmem>>, %arg8: memref<1x1xf32, #tpu.memory_space<smem>>, %arg9: memref<8x1xf32, #tpu.memory_space<vmem>>) attributes {dimension_semantics = [#tpu.dimension_semantics<parallel>], iteration_bounds = array<i64: 1>, scalar_prefetch = 0 : i64, scratch_operands = 0 : i64, tpu.core_type = #tpu.core_type<tc>, window_params = [{transform_indices = @transform_0, window_bounds = array<i64: 8, 35>}, {transform_indices = @transform_1, window_bounds = array<i64: 8, 3>}, {pipeline_mode = #tpu.pipeline_mode<synchronous>, transform_indices = @transform_2, window_bounds = array<i64: 35, 180>}, {pipeline_mode = #tpu.pipeline_mode<synchronous>, transform_indices = @transform_3, window_bounds = array<i64: 3, 180>}, {pipeline_mode = #tpu.pipeline_mode<synchronous>, transform_indices = @transform_4, window_bounds = array<i64: 2, 180>}, {pipeline_mode = #tpu.pipeline_mode<synchronous>, transform_indices = @transform_5, window_bounds = array<i64: 180, 180>}, {pipeline_mode = #tpu.pipeline_mode<synchronous>, transform_indices = @transform_6, window_bounds = array<i64: 180, 1>}, {transform_indices = @transform_7, window_bounds = array<i64: 1, 1>}, {transform_indices = @transform_8, window_bounds = array<i64: 8, 1>}]} {
    %c0 = arith.constant 0 : index
    %c0_0 = arith.constant 0 : index
    %0 = vector.load %arg1[%c0, %c0_0] : memref<8x35xf32, #tpu.memory_space<vmem>>, vector<8x35xf32>
    %c0_1 = arith.constant 0 : index
    %c0_2 = arith.constant 0 : index
    %1 = vector.load %arg2[%c0_1, %c0_2] : memref<8x3xf32, #tpu.memory_space<vmem>>, vector<8x3xf32>
    %c0_3 = arith.constant 0 : index
    %c0_4 = arith.constant 0 : index
    %2 = vector.load %arg3[%c0_3, %c0_4] : memref<35x180xf32, #tpu.memory_space<vmem>>, vector<35x180xf32>
    %cst = arith.constant dense<0.000000e+00> : vector<8x180xf32>
    %3 = tpu.matmul %0, %2, %cst {dimension_numbers = #tpu.dot_dimension_numbers<[1], [0], [0], [1], [0, 0, 1, 1], [], []>} : vector<8x35xf32>, vector<35x180xf32>, vector<8x180xf32> -> vector<8x180xf32>
    %c0_5 = arith.constant 0 : index
    %c0_6 = arith.constant 0 : index
    %4 = vector.load %arg4[%c0_5, %c0_6] : memref<3x180xf32, #tpu.memory_space<vmem>>, vector<3x180xf32>
    %cst_7 = arith.constant dense<0.000000e+00> : vector<8x180xf32>
    %5 = tpu.matmul %1, %4, %cst_7 {dimension_numbers = #tpu.dot_dimension_numbers<[1], [0], [0], [1], [0, 0, 1, 1], [], []>} : vector<8x3xf32>, vector<3x180xf32>, vector<8x180xf32> -> vector<8x180xf32>
    %6 = arith.addf %3, %5 : vector<8x180xf32>
    %c0_8 = arith.constant 0 : index
    %c0_9 = arith.constant 0 : index
    %7 = vector.load %arg5[%c0_8, %c0_9] : memref<2x180xf32, #tpu.memory_space<vmem>>, vector<1x180xf32>
    %8 = vector.broadcast %7 : vector<1x180xf32> to vector<8x180xf32>
    %9 = arith.addf %6, %8 : vector<8x180xf32>
    %cst_10 = arith.constant 0.000000e+00 : f32
    %10 = vector.broadcast %cst_10 : f32 to vector<8x180xf32>
    %11 = arith.maximumf %9, %10 : vector<8x180xf32>
    %c0_11 = arith.constant 0 : index
    %c0_12 = arith.constant 0 : index
    %12 = vector.load %arg6[%c0_11, %c0_12] : memref<180x180xf32, #tpu.memory_space<vmem>>, vector<180x180xf32>
    %cst_13 = arith.constant dense<0.000000e+00> : vector<8x180xf32>
    %13 = tpu.matmul %11, %12, %cst_13 {dimension_numbers = #tpu.dot_dimension_numbers<[1], [0], [0], [1], [0, 0, 1, 1], [], []>} : vector<8x180xf32>, vector<180x180xf32>, vector<8x180xf32> -> vector<8x180xf32>
    %c1 = arith.constant 1 : index
    %c0_14 = arith.constant 0 : index
    %14 = vector.load %arg5[%c1, %c0_14] : memref<2x180xf32, #tpu.memory_space<vmem>>, vector<1x180xf32>
    %15 = vector.broadcast %14 : vector<1x180xf32> to vector<8x180xf32>
    %16 = arith.addf %13, %15 : vector<8x180xf32>
    %cst_15 = arith.constant 0.000000e+00 : f32
    %17 = vector.broadcast %cst_15 : f32 to vector<8x180xf32>
    %18 = arith.maximumf %16, %17 : vector<8x180xf32>
    %c0_16 = arith.constant 0 : index
    %c0_17 = arith.constant 0 : index
    %19 = vector.load %arg7[%c0_16, %c0_17] : memref<180x1xf32, #tpu.memory_space<vmem>>, vector<180x1xf32>
    %cst_18 = arith.constant dense<0.000000e+00> : vector<8x1xf32>
    %20 = tpu.matmul %18, %19, %cst_18 {dimension_numbers = #tpu.dot_dimension_numbers<[1], [0], [0], [1], [0, 0, 1, 1], [], []>} : vector<8x180xf32>, vector<180x1xf32>, vector<8x1xf32> -> vector<8x1xf32>
    %c0_19 = arith.constant 0 : index
    %c0_20 = arith.constant 0 : index
    %21 = memref.load %arg8[%c0_19, %c0_20] : memref<1x1xf32, #tpu.memory_space<smem>>
    %22 = vector.broadcast %21 : f32 to vector<8x1xf32>
    %23 = arith.addf %20, %22 : vector<8x1xf32>
    %c0_21 = arith.constant 0 : index
    %c0_22 = arith.constant 0 : index
    %24 = vector.load %arg9[%c0_21, %c0_22] : memref<8x1xf32, #tpu.memory_space<vmem>>, vector<8x1xf32>
    tpu.vector_store %arg9[%c0_21, %c0_22], %23 {strides = array<i32>} : memref<8x1xf32, #tpu.memory_space<vmem>>, vector<8x1xf32>,
    return
  }
  func.func @transform_0(%arg0: i32) -> (i32, i32) {
    %c0_i32 = arith.constant 0 : i32
    %c0_i32_0 = arith.constant 0 : i32
    return %arg0, %c0_i32 : i32, i32
  }
  func.func @transform_1(%arg0: i32) -> (i32, i32) {
    %c0_i32 = arith.constant 0 : i32
    %c0_i32_0 = arith.constant 0 : i32
    return %arg0, %c0_i32 : i32, i32
  }
  func.func @transform_2(%arg0: i32) -> (i32, i32) {
    %c0_i32 = arith.constant 0 : i32
    %c0_i32_0 = arith.constant 0 : i32
    %c0_i32_1 = arith.constant 0 : i32
    return %c0_i32, %c0_i32_0 : i32, i32
  }
  func.func @transform_3(%arg0: i32) -> (i32, i32) {
    %c0_i32 = arith.constant 0 : i32
    %c0_i32_0 = arith.constant 0 : i32
    %c0_i32_1 = arith.constant 0 : i32
    return %c0_i32, %c0_i32_0 : i32, i32
  }
  func.func @transform_4(%arg0: i32) -> (i32, i32) {
    %c0_i32 = arith.constant 0 : i32
    %c0_i32_0 = arith.constant 0 : i32
    %c0_i32_1 = arith.constant 0 : i32
    return %c0_i32, %c0_i32_0 : i32, i32
  }
  func.func @transform_5(%arg0: i32) -> (i32, i32) {
    %c0_i32 = arith.constant 0 : i32
    %c0_i32_0 = arith.constant 0 : i32
    %c0_i32_1 = arith.constant 0 : i32
    return %c0_i32, %c0_i32_0 : i32, i32
  }
  func.func @transform_6(%arg0: i32) -> (i32, i32) {
    %c0_i32 = arith.constant 0 : i32
    %c0_i32_0 = arith.constant 0 : i32
    %c0_i32_1 = arith.constant 0 : i32
    return %c0_i32, %c0_i32_0 : i32, i32
  }
  func.func @transform_7(%arg0: i32) -> (i32, i32) {
    %c0_i32 = arith.constant 0 : i32
    %c0_i32_0 = arith.constant 0 : i32
    %c0_i32_1 = arith.constant 0 : i32
    return %c0_i32, %c0_i32_0 : i32, i32
  }
  func.func @transform_8(%arg0: i32) -> (i32, i32) {
    %c0_i32 = arith.constant 0 : i32
    %c0_i32_0 = arith.constant 0 : i32
    return %arg0, %c0_i32 : i32, i32
  }
}

</mosaic_0001>

<bundles_post_ra>
// kernel: critic_forward.1
= control target key start
LH: loop header
LB: loop body
LE: loop exit
PB: predicated region body
PF: predicated region fallthrough
CT: control target
= control target key end

     0   :  { %14 = vsyncpa [#allocation4], 0  ;;  %s477_s30 = smov [#allocation3]   ;;  %s478_s10 = smov 256   ;;  %s660_s0 = inlined_call_operand.vmem [shape: f32[2,35], index: 0, kind: input, shape index: {}]   ;;  %s661_s1 = inlined_call_operand.vmem [shape: f32[2,3], index: 1, kind: input, shape index: {}]   ;;  %s662_s2 = inlined_call_operand.vmem [shape: f32[35,180], index: 2, kind: input, shape index: {}]   ;;  %s663_s3 = inlined_call_operand.vmem [shape: f32[3,180], index: 3, kind: input, shape index: {}]   ;;  %s664_s4 = inlined_call_operand.vmem [shape: f32[2,180], index: 4, kind: input, shape index: {}]   ;;  %s665_s5 = inlined_call_operand.hbm [shape: f32[180,180], index: 5, kind: input, shape index: {}]   ;;  %s666_s6 = inlined_call_operand.vmem [shape: f32[180,1], index: 6, kind: input, shape index: {}]   ;;  %s667_s7 = inlined_call_operand.<no memory space> [shape: f32[1,1], index: 7, kind: input, shape index: {}]   ;;  %s668_s8 = inlined_call_operand.vmem [shape: f32[2,1], index: 8, kind: output, shape index: {}]  }
   0x1   :  { %s29_s29 = sshll.u32 %s665_s5, 4  ;;  %s31_s9 = sshll.u32 %s477_s30, 4  ;;  %s30_s29 = int_to_ptr.hbm [resolvable:$true] %s29_s29  ;;  %s32_s9 = int_to_ptr.vmem [resolvable:$true] %s31_s9 }
   0x2   :  { %s479_s11 = smov 16  }
   0x3   :  { %37 = dma.hbm_to_vmem [thread:$0]  %s30_s29, 5888, %s32_s9, [#allocation4], %s478_s10, %s478_s10, %s479_s11  }
   0x4   :  { %475 = dma.done.wait [#allocation4], 5888  }
   0x5   :  { %476 = vsyncadd [#allocation4], 4294961408  ;;  %vm67_vm0 = vcmask 1042432   ;;  %v56_v0 = vld [vmem:[%s662_s2 + $0x40] sm:$0x7]  ;;  %v54_v1 = vld [vmem:[%s662_s2 + $0x30] sm:$0xff] }
   0x6   :  { %v57_v2 = vld [vmem:[%s662_s2 + $0x48] sm:$0x7]  ;;  %437 = vmatpush.msk.msra.mxu2 %vm67_vm0, %v56_v0  ;;  %v55_v3 = vld [vmem:[%s662_s2 + $0x38] sm:$0xff]  ;;  %v52_v4 = vld [vmem:[%s662_s2 + $0x20] sm:$0xff]  ;;  %vm112_vm1 = vcmask 285696   ;;  %vm63_vm2 = vcmask 23552  }
   0x7   :  { %439 = vmatpush.msk.msra.mxu3 %vm67_vm0, %v57_v2  ;;  %v53_v5 = vld [vmem:[%s662_s2 + $0x28] sm:$0xff]  ;;  %v58_v6 = vld [vmem:[%s663_s3] sm:$0x77]  ;;  %v50_v7 = vld [vmem:[%s662_s2 + $0x10] sm:$0xff]  ;;  %vm229_vm3 = vcmask 1043456   ;;  %vm225_vm4 = vcmask 424960  }
   0x8   :  { %134 = vmatpush.msra.mxu2 %v54_v1  ;;  %60 = vst [vmem:[#allocation1] ss:$2 sm:$0xff] %v58_v6  ;;  %v51_v8 = vld [vmem:[%s662_s2 + $0x18] sm:$0xff]  ;;  %v48_v9 = vld [vmem:[%s662_s2] sm:$0xff]  ;;  %v49_v10 = vld [vmem:[%s662_s2 + $0x8] sm:$0xff]  ;;  %vm389_vm5 = vcmask 7168  }
   0x9   :  { %154 = vmatpush.msra.mxu3 %v55_v3  ;;  %v46_v11 = vld [vmem:[%s660_s0] sm:$0xff]  ;;  %v201_v14 = vld [vmem:[#allocation3 + $0xe8] sm:$0xff]  ;;  %v202_v17 = vld [vmem:[#allocation3 + $0xf0] sm:$0xff] }
   0xa   :  { %135 = vmatpush.msra.mxu2 %v52_v4  ;;  %v203_v12 = vld [vmem:[#allocation3 + $0xf8] sm:$0xff]  ;;  %v200_v19 = vld [vmem:[#allocation3 + $0xe0] sm:$0xff]  ;;  %v197_v20 = vld [vmem:[#allocation3 + $0xc8] sm:$0xff] }
   0xb   :  { %155 = vmatpush.msra.mxu3 %v53_v5  ;;  %v47_v13 = vld [vmem:[%s661_s1] sm:$0xff]  ;;  %v198_v21 = vld [vmem:[#allocation3 + $0xd0] sm:$0xff]  ;;  %v196_v23 = vld [vmem:[#allocation3 + $0xc0] sm:$0xff] }
   0xc   :  { %136 = vmatpush.msra.mxu2 %v50_v7  ;;  %v199_v18 = vld [vmem:[#allocation3 + $0xd8] sm:$0xff]  ;;  %v193_v24 = vld [vmem:[#allocation3 + $0xa8] sm:$0xff]  ;;  %v194_v25 = vld [vmem:[#allocation3 + $0xb0] sm:$0xff] }
   0xd   :  { %156 = vmatpush.msra.mxu3 %v51_v8  ;;  %v195_v22 = vld [vmem:[#allocation3 + $0xb8] sm:$0xff]  ;;  %v192_v27 = vld [vmem:[#allocation3 + $0xa0] sm:$0xff]  ;;  %v189_v28 = vld [vmem:[#allocation3 + $0x88] sm:$0xff] }
   0xe   :  { %137 = vmatpush.msra.mxu2 %v48_v9  ;;  %v191_v26 = vld [vmem:[#allocation3 + $0x98] sm:$0xff]  ;;  %v190_v29 = vld [vmem:[#allocation3 + $0x90] sm:$0xff]  ;;  %v188_v31 = vld [vmem:[#allocation3 + $0x80] sm:$0xff] }
   0xf   :  { %157 = vmatpush.msra.mxu3 %v49_v10  ;;  %v61_v15 = vld.sshfl [vmem:[#allocation1] sm:$0xff pattern:$0x75316420]  ;;  %v62_v16 = vld.sshfl [vmem:[#allocation1 + $0x8] sm:$0xff pattern:$0x75316420]  ;;  %438 = vmatmul.msk.f32.vlgmr.msra.gmra.mxu2 %vm112_vm1, %v46_v11 }
  0x10   :  { %440 = vmatmul.msk.f32.vlgmr.msra.gmra.mxu3 %vm112_vm1, %v46_v11  ;;  %433 = vmatpush.msk.msra.mxu0 %vm67_vm0, %v61_v15  ;;  %v187_v30 = vld [vmem:[#allocation3 + $0x78] sm:$0xff]  ;;  %v186_v32 = vld [vmem:[#allocation3 + $0x70] sm:$0xff]  ;;  %v184_v33 = vld [vmem:[#allocation3 + $0x60] sm:$0xff] }
  0x11   :  { %276 = vmatpush.msrb.mxu2 %v203_v12  ;;  %434 = vmatmul.msk.f32.vlgmr.msra.gmra.mxu0 %vm63_vm2, %v47_v13  ;;  %v185_v34 = vld [vmem:[#allocation3 + $0x68] sm:$0xff]  ;;  %v182_v35 = vld [vmem:[#allocation3 + $0x50] sm:$0xff]  ;;  %v216_v36 = vld [vmem:[#allocation3 + $0x160] sm:$0xf] }
  0x12   :  { %435 = vmatpush.msk.msrb.mxu0 %vm67_vm0, %v62_v16  ;;  %v183_v37 = vld [vmem:[#allocation3 + $0x58] sm:$0xff]  ;;  %442 = vmatpush.msk.msra.mxu1 %vm229_vm3, %v216_v36  ;;  %v217_v38 = vld [vmem:[#allocation3 + $0x168] sm:$0xf]  ;;  %v180_v39 = vld [vmem:[#allocation3 + $0x40] sm:$0xff] }
  0x13   :  { %277 = vmatpush.msrb.mxu2 %v201_v14  ;;  %v214_v40 = vld [vmem:[#allocation3 + $0x150] sm:$0xff]  ;;  %v181_v41 = vld [vmem:[#allocation3 + $0x48] sm:$0xff]  ;;  %v215_v42 = vld [vmem:[#allocation3 + $0x158] sm:$0xff]  ;;  %444 = vmatpush.msk.msrb.mxu3 %vm229_vm3, %v217_v38 }
  0x14   :  { %236 = vmatpush.msra.mxu0 %v202_v17  ;;  %266 = vmatpush.msra.mxu1 %v214_v40  ;;  %v178_v43 = vld [vmem:[#allocation3 + $0x30] sm:$0xff]  ;;  %v212_v44 = vld [vmem:[#allocation3 + $0x140] sm:$0xff]  ;;  %v179_v45 = vld [vmem:[#allocation3 + $0x38] sm:$0xff] }
  0x15   :  { %278 = vmatpush.msrb.mxu2 %v199_v18  ;;  %306 = vmatpush.msrb.mxu3 %v215_v42  ;;  %v213_v46 = vld [vmem:[#allocation3 + $0x148] sm:$0xff]  ;;  %v176_v47 = vld [vmem:[#allocation3 + $0x20] sm:$0xff]  ;;  %v210_v48 = vld [vmem:[#allocation3 + $0x130] sm:$0xff] }
  0x16   :  { %237 = vmatpush.msra.mxu0 %v200_v19  ;;  %267 = vmatpush.msra.mxu1 %v212_v44  ;;  %v177_v49 = vld [vmem:[#allocation3 + $0x28] sm:$0xff]  ;;  %v211_v50 = vld [vmem:[#allocation3 + $0x138] sm:$0xff]  ;;  %v174_v51 = vld [vmem:[#allocation3 + $0x10] sm:$0xff] }
  0x17   :  { %279 = vmatpush.msrb.mxu2 %v197_v20  ;;  %307 = vmatpush.msrb.mxu3 %v213_v46  ;;  %v208_v52 = vld [vmem:[#allocation3 + $0x120] sm:$0xff]  ;;  %v175_v53 = vld [vmem:[#allocation3 + $0x18] sm:$0xff]  ;;  %v209_v54 = vld [vmem:[#allocation3 + $0x128] sm:$0xff]  ;;  %v342_v46 = vstv %s667_s7 }
  0x18   :  { %238 = vmatpush.msra.mxu0 %v198_v21  ;;  %268 = vmatpush.msra.mxu1 %v210_v48  ;;  %v172_v55 = vld [vmem:[#allocation3] sm:$0xff]  ;;  %v206_v56 = vld [vmem:[#allocation3 + $0x110] sm:$0xff]  ;;  %v173_v57 = vld [vmem:[#allocation3 + $0x8] sm:$0xff] }
  0x19   :  { %280 = vmatpush.msrb.mxu2 %v195_v22  ;;  %436 = vmatmul.msk.f32.vlgmr.msrb.gmra.mxu0 %vm63_vm2, %v47_v13  ;;  %v207_v58 = vld [vmem:[#allocation3 + $0x118] sm:$0xff]  ;;  %v204_v59 = vld [vmem:[#allocation3 + $0x100] sm:$0xff]  ;;  %v205_v60 = vld [vmem:[#allocation3 + $0x108] sm:$0xff] }
  0x1a   :  { %239 = vmatpush.msra.mxu0 %v196_v23  ;;  %308 = vmatpush.msrb.mxu3 %v211_v50  ;;  %v333_v61 = vld [vmem:[%s666_s6 + $0x78] sm:$0xff]  ;;  %v332_v62 = vld [vmem:[%s666_s6 + $0x70] sm:$0xff]  ;;  %v331_v63 = vld [vmem:[%s666_s6 + $0x68] sm:$0xff] }
  0x1b   :  { %281 = vmatpush.msrb.mxu2 %v193_v24  ;;  %269 = vmatpush.msra.mxu1 %v208_v52  ;;  %v330_v0 = vld [vmem:[%s666_s6 + $0x60] sm:$0xff]  ;;  %v329_v1 = vld [vmem:[%s666_s6 + $0x58] sm:$0xff]  ;;  %v328_v2 = vld [vmem:[%s666_s6 + $0x50] sm:$0xff] }
  0x1c   :  { %240 = vmatpush.msra.mxu0 %v194_v25  ;;  %309 = vmatpush.msrb.mxu3 %v209_v54  ;;  %v327_v3 = vld [vmem:[%s666_s6 + $0x48] sm:$0xff]  ;;  %v326_v4 = vld [vmem:[%s666_s6 + $0x40] sm:$0xff]  ;;  %v325_v5 = vld [vmem:[%s666_s6 + $0x38] sm:$0xff] }
  0x1d   :  { %282 = vmatpush.msrb.mxu2 %v191_v26  ;;  %270 = vmatpush.msra.mxu1 %v206_v56  ;;  %v324_v6 = vld [vmem:[%s666_s6 + $0x30] sm:$0xff]  ;;  %v162_v8 = vld [vmem:[%s664_s4] ss:$2 sm:$0x3]  ;;  %v323_v9 = vld [vmem:[%s666_s6 + $0x28] sm:$0xff] }
  0x1e   :  { %241 = vmatpush.msra.mxu0 %v192_v27  ;;  %310 = vmatpush.msrb.mxu3 %v207_v58  ;;  %v164_v10 = vperm.slane %v162_v8, 0  ;;  %v322_v11 = vld [vmem:[%s666_s6 + $0x20] sm:$0xff]  ;;  %v165_v16 = vperm.slane %v162_v8, 1  ;;  %v321_v22 = vld [vmem:[%s666_s6 + $0x18] sm:$0xff]  ;;  %v340_v23 = vld [vmem:[%s666_s6 + $0xb0] sm:$0xf] }
  0x1f   :  { %283 = vmatpush.msrb.mxu2 %v189_v28  ;;  %271 = vmatpush.msra.mxu1 %v204_v59  ;;  %v320_v24 = vld [vmem:[%s666_s6 + $0x10] sm:$0xff]  ;;  %v339_v25 = vld [vmem:[%s666_s6 + $0xa8] sm:$0xff]  ;;  %v338_v27 = vld [vmem:[%s666_s6 + $0xa0] sm:$0xff] }
  0x20   :  { %242 = vmatpush.msra.mxu0 %v190_v29  ;;  %311 = vmatpush.msrb.mxu3 %v205_v60  ;;  %v319_v26 = vld [vmem:[%s666_s6 + $0x8] sm:$0xff]  ;;  %v318_v28 = vld [vmem:[%s666_s6] sm:$0xff]  ;;  %v337_v29 = vld [vmem:[%s666_s6 + $0x98] sm:$0xff] }
  0x21   :  { %284 = vmatpush.msrb.mxu2 %v187_v30  ;;  %349 = vmatpush.msrb.mxu1 %v333_v61  ;;  %v336_v30 = vld [vmem:[%s666_s6 + $0x90] sm:$0xff] }
  0x22   :  { %243 = vmatpush.msra.mxu0 %v188_v31  ;;  %446 = vmatpush.msk.msra.mxu3 %vm229_vm3, %v340_v23  ;;  %v335_v31 = vld [vmem:[%s666_s6 + $0x88] sm:$0xff] }
  0x23   :  { %285 = vmatpush.msrb.mxu2 %v185_v34  ;;  %350 = vmatpush.msrb.mxu1 %v332_v62 }
  0x24   :  { %244 = vmatpush.msra.mxu0 %v186_v32  ;;  %379 = vmatpush.msra.mxu3 %v339_v25  ;;  %v334_v32 = vld [vmem:[%s666_s6 + $0x80] sm:$0xff] }
  0x25   :  { %286 = vmatpush.msrb.mxu2 %v183_v37  ;;  %351 = vmatpush.msrb.mxu1 %v331_v63 }
  0x26   :  { %245 = vmatpush.msra.mxu0 %v184_v33  ;;  %380 = vmatpush.msra.mxu3 %v338_v27  ;;  %v441_v33 = vld [vmem:[%s664_s4 + $0x1] ss:$2 sm:$0x3] }
  0x27   :  { %287 = vmatpush.msrb.mxu2 %v181_v41  ;;  %352 = vmatpush.msrb.mxu1 %v330_v0  ;;  %v221_v34 = vperm.slane %v441_v33, 0  ;;  %v222_v37 = vperm.slane %v441_v33, 1 }
  0x28   :  { %246 = vmatpush.msra.mxu0 %v182_v35  ;;  %381 = vmatpush.msra.mxu3 %v337_v29 }
  0x29   :  { %288 = vmatpush.msrb.mxu2 %v179_v45  ;;  %353 = vmatpush.msrb.mxu1 %v329_v1 }
  0x2a   :  { %247 = vmatpush.msra.mxu0 %v180_v39  ;;  %382 = vmatpush.msra.mxu3 %v336_v30 }
  0x2b   :  { %289 = vmatpush.msrb.mxu2 %v177_v49  ;;  %354 = vmatpush.msrb.mxu1 %v328_v2 }
  0x2c   :  { %248 = vmatpush.msra.mxu0 %v178_v43  ;;  %383 = vmatpush.msra.mxu3 %v335_v31 }
  0x2d   :  { %290 = vmatpush.msrb.mxu2 %v175_v53  ;;  %355 = vmatpush.msrb.mxu1 %v327_v3 }
  0x2e   :  { %249 = vmatpush.msra.mxu0 %v176_v47  ;;  %384 = vmatpush.msra.mxu3 %v334_v32 }
  0x2f   :  { %291 = vmatpush.msrb.mxu2 %v173_v57  ;;  %356 = vmatpush.msrb.mxu1 %v326_v4 }
  0x30   :  { %250 = vmatpush.msra.mxu0 %v174_v51 }
  0x31   :  { %357 = vmatpush.msrb.mxu1 %v325_v5 }
  0x32   :  { %251 = vmatpush.msra.mxu0 %v172_v55 }
  0x33   :  { %358 = vmatpush.msrb.mxu1 %v324_v6 }
  0x35   :  { %359 = vmatpush.msrb.mxu1 %v323_v9 }
  0x37   :  { %360 = vmatpush.msrb.mxu1 %v322_v11 }
  0x39   :  { %361 = vmatpush.msrb.mxu1 %v321_v22 }
  0x3b   :  { %362 = vmatpush.msrb.mxu1 %v320_v24 }
  0x3d   :  { %363 = vmatpush.msrb.mxu1 %v319_v26 }
  0x3f   :  { %364 = vmatpush.msrb.mxu1 %v318_v28 }
  0x8e   :  { %v89_v7 = vpop.f32.mrf.mxu0 }
  0x92   :  { %v139_v12 = vpop.f32.mrf.mxu2 }
  0x93   :  { %v140_v13 = vadd.f32 %v139_v12, %v89_v7  ;;  %v159_v14 = vpop.f32.mrf.mxu3 }
  0x95   :  { %v168_v15 = vadd.f32 %v164_v10, %v140_v13 }
  0x96   :  { %v109_v17 = vpop.f32.mrf.mxu0 }
  0x97   :  { %v170_v18 = vmax.f32 %v168_v15, 0.0  ;;  %v160_v19 = vadd.f32 %v159_v14, %v109_v17 }
  0x99   :  { %v169_v20 = vadd.f32 %v165_v16, %v160_v19  ;;  %252 = vmatmul.f32.vlgmr.msra.gmra.mxu0 %v170_v18  ;;  %292 = vmatmul.f32.vlgmr.msrb.gmra.mxu2 %v170_v18 }
  0x9b   :  { %v171_v21 = vmax.f32 %v169_v20, 0.0 }
  0x9d   :  { %443 = vmatmul.msk.f32.vlgmr.msra.gmra.mxu1 %vm225_vm4, %v171_v21  ;;  %445 = vmatmul.msk.f32.vlgmr.msrb.gmra.mxu3 %vm225_vm4, %v171_v21 }
 0x116   :  { %v253_v35 = vpop.f32.mrf.mxu0 }
 0x117   :  { %v254_v36 = vadd.f32 %v253_v35, %v221_v34 }
 0x11a   :  { %v273_v38 = vpop.f32.mrf.mxu1 }
 0x11b   :  { %v274_v39 = vadd.f32 %v273_v38, %v254_v36 }
 0x11c   :  { %v293_v40 = vpop.f32.mrf.mxu2 }
 0x11d   :  { %v316_v41 = vmax.f32 %v274_v39, 0.0  ;;  %v294_v42 = vadd.f32 %v293_v40, %v222_v37 }
 0x11f   :  { %365 = vmatmul.f32.vlgmr.msrb.gmra.mxu1 %v316_v41 }
 0x120   :  { %v313_v43 = vpop.f32.mrf.mxu3 }
 0x121   :  { %v314_v44 = vadd.f32 %v313_v43, %v294_v42 }
 0x123   :  { %v317_v45 = vmax.f32 %v314_v44, 0.0 }
 0x125   :  { %447 = vmatmul.msk.f32.vlgmr.msra.gmra.mxu3 %vm225_vm4, %v317_v45 }
 0x19c   :  { %v366_v47 = vpop.f32.mrf.mxu1 }
 0x19d   :  { %v367_v48 = vadd.f32 %v366_v47, %v342_v46 }
 0x1a8   :  { %v386_v49 = vpop.f32.mrf.mxu3 }
 0x1a9   :  { %v387_v50 = vadd.f32 %v386_v49, %v367_v48 }
 0x1ab   :  { %390 = vst.msk [vmem:[#allocation5] sm:$0xff] %vm389_vm5, %v387_v50 }
 0x1b2   :  { %v409_v51 = vld [vmem:[#allocation5] sm:$0x3] }
 0x1b3   :  { %410 = vst [vmem:[%s668_s8] sm:$0x3] %v409_v51 }
 0x1b4   :  { %428 = vsyncpa [#allocation4], 1 }

</bundles_post_ra>
